<compile_context>
chip_gen: v7x
topology: tpu7x:2x2x1
jax: 0.10.0
libtpu: 0.0.40
codegen_flags: <defaults>
</compile_context>

<pallas_src>
import jax
import jax.numpy as jnp
from jax.experimental import pallas as pl
from jax.experimental.pallas import tpu as pltpu

_EPS = 1e-5
_LANE = 128


def _pad_to(n, m):
    return ((n + m - 1) // m) * m


def _mlp_kernel(x_ref, w1_ref, gb1_ref, w2_ref, gb2_ref, w3_ref, b3_ref, o_ref):
    # x is f32 (cast to bf16 in-kernel, rides free VPU slack); w* are pre-cast,
    # pre-padded bf16; gb*/b3 are f32.  All epilogue math stays f32 (v5e VPU/EUP
    # have no bf16 path).
    x = x_ref[...].astype(jnp.bfloat16)

    # ---- layer1: Linear (bias cancelled by BN) -> BN(batch stats) -> ReLU ----
    h1 = jnp.dot(x, w1_ref[...], preferred_element_type=jnp.float32)
    m1 = jnp.mean(h1, axis=0, keepdims=True)
    v1 = jnp.mean(h1 * h1, axis=0, keepdims=True) - m1 * m1      # biased var, one pass
    gb1 = gb1_ref[...]                                           # (2, H1p): [gamma; beta]
    s1 = jax.lax.rsqrt(v1 + _EPS) * gb1[0:1, :]                  # EUP rsqrt (free slot)
    c1 = gb1[1:2, :] - m1 * s1                                   # fold BN: one mul-add/elem
    h1 = jnp.maximum(h1 * s1 + c1, 0.0)

    # ---- layer2: Linear (bias cancelled by BN) -> BN(batch stats) -> ReLU ----
    h2 = jnp.dot(h1.astype(jnp.bfloat16), w2_ref[...],
                 preferred_element_type=jnp.float32)
    m2 = jnp.mean(h2, axis=0, keepdims=True)
    v2 = jnp.mean(h2 * h2, axis=0, keepdims=True) - m2 * m2
    gb2 = gb2_ref[...]                                           # (2, H2p)
    s2 = jax.lax.rsqrt(v2 + _EPS) * gb2[0:1, :]
    c2 = gb2[1:2, :] - m2 * s2
    h2 = jnp.maximum(h2 * s2 + c2, 0.0)

    # ---- layer3: plain Linear (bias survives); lane-dense padded store ----
    out = jnp.dot(h2.astype(jnp.bfloat16), w3_ref[...],
                  preferred_element_type=jnp.float32)
    o_ref[...] = out + b3_ref[...]


def prepare_kernel_params(params):
    """One-time conversion of the PyTorch-layout f32 params into the
    kernel-resident pack: bf16 weights (pre-cast once, kept resident), feature
    dims zero-padded to lane multiples (128), gamma/beta packed into (2, Hp)
    f32 slabs, b1/b2 dropped (cancelled by train-mode BatchNorm)."""
    (w1, b1, g1, bt1, w2, b2, g2, bt2, w3, b3) = params
    del b1, b2
    in_dim, h1 = w1.shape
    h2 = w2.shape[1]
    out_dim = w3.shape[1]
    h1p, h2p, outp = (_pad_to(d, _LANE) for d in (h1, h2, out_dim))

    def padw(w, rows_p, cols_p):
        r, c = w.shape
        return jnp.pad(w, ((0, rows_p - r), (0, cols_p - c))).astype(jnp.bfloat16)

    # Keep w1's fan_in unpadded so runtime x needs no per-call padding op
    # (block == full array satisfies the (8,128) rule).
    w1p = padw(w1, in_dim, h1p)
    w2p = padw(w2, h1p, h2p)
    w3p = padw(w3, h2p, outp)
    gb1 = jnp.pad(jnp.concatenate([g1, bt1], axis=0), ((0, 0), (0, h1p - h1)))
    gb2 = jnp.pad(jnp.concatenate([g2, bt2], axis=0), ((0, 0), (0, h2p - h2)))
    b3p = jnp.pad(b3, ((0, 0), (0, outp - out_dim)))
    return {"w1": w1p, "gb1": gb1, "w2": w2p, "gb2": gb2,
            "w3": w3p, "b3": b3p, "out_dim": out_dim}


def net_forward(x, kparams):
    """Fused MLP forward (Linear+BN+ReLU, Linear+BN+ReLU, Linear) in one kernel."""
    n, in_dim = x.shape
    w1, gb1 = kparams["w1"], kparams["gb1"]
    w2, gb2 = kparams["w2"], kparams["gb2"]
    w3, b3 = kparams["w3"], kparams["b3"]
    out_dim = kparams["out_dim"]
    assert w1.shape[0] == in_dim
    h1p, h2p, outp = w1.shape[1], w2.shape[1], w3.shape[1]

    args = (x, w1, gb1, w2, gb2, w3, b3)

    flops = 2 * n * (in_dim * h1p + h1p * h2p + h2p * outp)
    bytes_accessed = sum(int(a.size) * a.dtype.itemsize for a in args) \
        + n * outp * 4
    cost = pl.CostEstimate(flops=flops,
                           transcendentals=h1p + h2p,     # rsqrt per feature
                           bytes_accessed=bytes_accessed)

    # VMEM budget: double-buffered I/O + f32 intermediates + headroom,
    # capped below v7x's 64 MiB physical VMEM per TensorCore.
    vmem = 2 * bytes_accessed + 4 * n * (h1p + h2p) * 4 + (4 << 20)
    vmem = int(min(max(vmem, 16 << 20), 56 << 20))

    out = pl.pallas_call(
        _mlp_kernel,
        out_shape=jax.ShapeDtypeStruct((n, outp), jnp.float32),
        grid=(1,),
        in_specs=[pl.BlockSpec(a.shape, lambda i: (0, 0)) for a in args],
        out_specs=pl.BlockSpec((n, outp), lambda i: (0, 0)),
        compiler_params=pltpu.CompilerParams(
            dimension_semantics=("arbitrary",),
            vmem_limit_bytes=vmem),
        cost_estimate=cost,
    )(*args)
    # TODO(synk): on v7x, megacore-shard a feature-split grid axis instead of
    #             grid=(1,) once production sizes justify it.
    return out[:, :out_dim] if outp != out_dim else out


def init_params(key, in_dim, n_hidden_1, n_hidden_2, out_dim):
    """Parameter init mirroring the PyTorch module's shapes (weights transposed)."""
    k1, k2, k3, k4, k5, k6 = jax.random.split(key, 6)

    def lin(kw, kb, fan_in, fan_out):
        bound = 1.0 / jnp.sqrt(float(fan_in))
        w = jax.random.uniform(kw, (fan_in, fan_out), jnp.float32, -bound, bound)
        b = jax.random.uniform(kb, (1, fan_out), jnp.float32, -bound, bound)
        return w, b

    w1, b1 = lin(k1, k2, in_dim, n_hidden_1)
    w2, b2 = lin(k3, k4, n_hidden_1, n_hidden_2)
    w3, b3 = lin(k5, k6, n_hidden_2, out_dim)

    g1 = jnp.ones((1, n_hidden_1), jnp.float32)
    bt1 = jnp.zeros((1, n_hidden_1), jnp.float32)
    g2 = jnp.ones((1, n_hidden_2), jnp.float32)
    bt2 = jnp.zeros((1, n_hidden_2), jnp.float32)

    return (w1, b1, g1, bt1, w2, b2, g2, bt2, w3, b3)


def _reference_f32(x, params):
    """Full-f32 PyTorch-equivalent forward (biases included, centered variance)."""
    (w1, b1, g1, bt1, w2, b2, g2, bt2, w3, b3) = params

    def bn(h, g, bt):
        m = jnp.mean(h, axis=0, keepdims=True)
        v = jnp.mean((h - m) ** 2, axis=0, keepdims=True)
        return (h - m) / jnp.sqrt(v + _EPS) * g + bt

    h = jax.nn.relu(bn(x @ w1 + b1, g1, bt1))
    h = jax.nn.relu(bn(h @ w2 + b2, g2, bt2))
    return h @ w3 + b3


def _reference_mirror(x, params):
    """Plain-JAX reference mirroring the kernel's bf16-operand / f32-accum math."""
    (w1, b1, g1, bt1, w2, b2, g2, bt2, w3, b3) = params
    del b1, b2
    bf = jnp.bfloat16

    def bn_relu(h, g, bt):
        m = jnp.mean(h, axis=0, keepdims=True)
        v = jnp.mean(h * h, axis=0, keepdims=True) - m * m
        s = jax.lax.rsqrt(v + _EPS) * g
        return jax.nn.relu(h * s + (bt - m * s))

    h = jnp.dot(x.astype(bf), w1.astype(bf), preferred_element_type=jnp.float32)
    h = bn_relu(h, g1, bt1)
    h = jnp.dot(h.astype(bf), w2.astype(bf), preferred_element_type=jnp.float32)
    h = bn_relu(h, g2, bt2)
    return jnp.dot(h.astype(bf), w3.astype(bf),
                   preferred_element_type=jnp.float32) + b3


if __name__ == "__main__":
    in_dim, n_hidden_1, n_hidden_2, out_dim = 32, 64, 32, 16
    batch = 16   # >=16 rows so bf16 sublane packing is not pure padding

    key = jax.random.PRNGKey(0)
    kx, kp = jax.random.split(key)
    x = jax.random.normal(kx, (batch, in_dim), jnp.float32)
    params = init_params(kp, in_dim, n_hidden_1, n_hidden_2, out_dim)
    kparams = prepare_kernel_params(params)   # one-time bf16 cast + lane padding

    out = jax.block_until_ready(net_forward(x, kparams))
    assert out.shape == (batch, out_dim)
    assert bool(jnp.all(jnp.isfinite(out)))

    # Tight check vs. a reference doing the same bf16-operand math.
    ref_mirror = _reference_mirror(x, params)
    assert jnp.allclose(out, ref_mirror, atol=2e-3, rtol=2e-3), \
        float(jnp.max(jnp.abs(out - ref_mirror)))

    # Loose check vs. the exact f32 PyTorch-semantics forward (bf16 matmul noise).
    ref_f32 = _reference_f32(x, params)
    assert jnp.allclose(out, ref_f32, atol=1e-1, rtol=1e-1), \
        float(jnp.max(jnp.abs(out - ref_f32)))

    print("KERNEL_OK")
</pallas_src>

<mosaic_0001>
module attributes {stable_mosaic.version = 11 : i64} {
  func.func @_mlp_kernel(%arg0: i32, %arg1: memref<16x32xf32, #tpu.memory_space<vmem>>, %arg2: memref<32x128xbf16, #tpu.memory_space<vmem>>, %arg3: memref<2x128xf32, #tpu.memory_space<vmem>>, %arg4: memref<128x128xbf16, #tpu.memory_space<vmem>>, %arg5: memref<2x128xf32, #tpu.memory_space<vmem>>, %arg6: memref<128x128xbf16, #tpu.memory_space<vmem>>, %arg7: memref<1x128xf32, #tpu.memory_space<vmem>>, %arg8: memref<16x128xf32, #tpu.memory_space<vmem>>) attributes {dimension_semantics = [#tpu.dimension_semantics<arbitrary>], iteration_bounds = array<i64: 1>, scalar_prefetch = 0 : i64, scratch_operands = 0 : i64, tpu.core_type = #tpu.core_type<tc>, window_params = [{pipeline_mode = #tpu.pipeline_mode<synchronous>, transform_indices = @transform_0, window_bounds = array<i64: 16, 32>}, {pipeline_mode = #tpu.pipeline_mode<synchronous>, transform_indices = @transform_1, window_bounds = array<i64: 32, 128>}, {pipeline_mode = #tpu.pipeline_mode<synchronous>, transform_indices = @transform_2, window_bounds = array<i64: 2, 128>}, {pipeline_mode = #tpu.pipeline_mode<synchronous>, transform_indices = @transform_3, window_bounds = array<i64: 128, 128>}, {pipeline_mode = #tpu.pipeline_mode<synchronous>, transform_indices = @transform_4, window_bounds = array<i64: 2, 128>}, {pipeline_mode = #tpu.pipeline_mode<synchronous>, transform_indices = @transform_5, window_bounds = array<i64: 128, 128>}, {pipeline_mode = #tpu.pipeline_mode<synchronous>, transform_indices = @transform_6, window_bounds = array<i64: 1, 128>}, {pipeline_mode = #tpu.pipeline_mode<synchronous>, transform_indices = @transform_7, window_bounds = array<i64: 16, 128>}]} {
    %c0 = arith.constant 0 : index
    %c0_0 = arith.constant 0 : index
    %0 = vector.load %arg1[%c0, %c0_0] : memref<16x32xf32, #tpu.memory_space<vmem>>, vector<16x32xf32>
    %1 = arith.truncf %0 : vector<16x32xf32> to vector<16x32xbf16>
    %c0_1 = arith.constant 0 : index
    %c0_2 = arith.constant 0 : index
    %2 = vector.load %arg2[%c0_1, %c0_2] : memref<32x128xbf16, #tpu.memory_space<vmem>>, vector<32x128xbf16>
    %cst = arith.constant dense<0.000000e+00> : vector<16x128xf32>
    %3 = tpu.matmul %1, %2, %cst {dimension_numbers = #tpu.dot_dimension_numbers<[1], [0], [0], [1], [0, 0, 1, 1], [], []>} : vector<16x32xbf16>, vector<32x128xbf16>, vector<16x128xf32> -> vector<16x128xf32>
    %cst_3 = arith.constant dense<0.000000e+00> : vector<128xf32>
    %4 = vector.multi_reduction <add>, %3, %cst_3 [0] : vector<16x128xf32> to vector<128xf32>
    %5 = vector.shape_cast %4 : vector<128xf32> to vector<1x128xf32>
    %cst_4 = arith.constant 1.600000e+01 : f32
    %6 = vector.broadcast %cst_4 : f32 to vector<1x128xf32>
    %7 = arith.divf %5, %6 : vector<1x128xf32>
    %8 = arith.mulf %3, %3 : vector<16x128xf32>
    %cst_5 = arith.constant dense<0.000000e+00> : vector<128xf32>
    %9 = vector.multi_reduction <add>, %8, %cst_5 [0] : vector<16x128xf32> to vector<128xf32>
    %10 = vector.shape_cast %9 : vector<128xf32> to vector<1x128xf32>
    %cst_6 = arith.constant 1.600000e+01 : f32
    %11 = vector.broadcast %cst_6 : f32 to vector<1x128xf32>
    %12 = arith.divf %10, %11 : vector<1x128xf32>
    %13 = arith.mulf %7, %7 : vector<1x128xf32>
    %14 = arith.subf %12, %13 : vector<1x128xf32>
    %c0_7 = arith.constant 0 : index
    %c0_8 = arith.constant 0 : index
    %15 = vector.load %arg3[%c0_7, %c0_8] : memref<2x128xf32, #tpu.memory_space<vmem>>, vector<2x128xf32>
    %cst_9 = arith.constant 9.99999974E-6 : f32
    %16 = vector.broadcast %cst_9 : f32 to vector<1x128xf32>
    %17 = arith.addf %14, %16 : vector<1x128xf32>
    %18 = math.rsqrt %17 : vector<1x128xf32>
    %19 = vector.extract_strided_slice %15 {offsets = [0, 0], sizes = [1, 128], strides = [1, 1]} : vector<2x128xf32> to vector<1x128xf32>
    %20 = arith.mulf %18, %19 : vector<1x128xf32>
    %21 = vector.extract_strided_slice %15 {offsets = [1, 0], sizes = [1, 128], strides = [1, 1]} : vector<2x128xf32> to vector<1x128xf32>
    %22 = arith.mulf %7, %20 : vector<1x128xf32>
    %23 = arith.subf %21, %22 : vector<1x128xf32>
    %24 = vector.broadcast %20 : vector<1x128xf32> to vector<16x128xf32>
    %25 = arith.mulf %3, %24 : vector<16x128xf32>
    %26 = vector.broadcast %23 : vector<1x128xf32> to vector<16x128xf32>
    %27 = arith.addf %25, %26 : vector<16x128xf32>
    %cst_10 = arith.constant 0.000000e+00 : f32
    %28 = vector.broadcast %cst_10 : f32 to vector<16x128xf32>
    %29 = arith.maximumf %27, %28 : vector<16x128xf32>
    %30 = arith.truncf %29 : vector<16x128xf32> to vector<16x128xbf16>
    %c0_11 = arith.constant 0 : index
    %c0_12 = arith.constant 0 : index
    %31 = vector.load %arg4[%c0_11, %c0_12] : memref<128x128xbf16, #tpu.memory_space<vmem>>, vector<128x128xbf16>
    %cst_13 = arith.constant dense<0.000000e+00> : vector<16x128xf32>
    %32 = tpu.matmul %30, %31, %cst_13 {dimension_numbers = #tpu.dot_dimension_numbers<[1], [0], [0], [1], [0, 0, 1, 1], [], []>} : vector<16x128xbf16>, vector<128x128xbf16>, vector<16x128xf32> -> vector<16x128xf32>
    %cst_14 = arith.constant dense<0.000000e+00> : vector<128xf32>
    %33 = vector.multi_reduction <add>, %32, %cst_14 [0] : vector<16x128xf32> to vector<128xf32>
    %34 = vector.shape_cast %33 : vector<128xf32> to vector<1x128xf32>
    %cst_15 = arith.constant 1.600000e+01 : f32
    %35 = vector.broadcast %cst_15 : f32 to vector<1x128xf32>
    %36 = arith.divf %34, %35 : vector<1x128xf32>
    %37 = arith.mulf %32, %32 : vector<16x128xf32>
    %cst_16 = arith.constant dense<0.000000e+00> : vector<128xf32>
    %38 = vector.multi_reduction <add>, %37, %cst_16 [0] : vector<16x128xf32> to vector<128xf32>
    %39 = vector.shape_cast %38 : vector<128xf32> to vector<1x128xf32>
    %cst_17 = arith.constant 1.600000e+01 : f32
    %40 = vector.broadcast %cst_17 : f32 to vector<1x128xf32>
    %41 = arith.divf %39, %40 : vector<1x128xf32>
    %42 = arith.mulf %36, %36 : vector<1x128xf32>
    %43 = arith.subf %41, %42 : vector<1x128xf32>
    %c0_18 = arith.constant 0 : index
    %c0_19 = arith.constant 0 : index
    %44 = vector.load %arg5[%c0_18, %c0_19] : memref<2x128xf32, #tpu.memory_space<vmem>>, vector<2x128xf32>
    %cst_20 = arith.constant 9.99999974E-6 : f32
    %45 = vector.broadcast %cst_20 : f32 to vector<1x128xf32>
    %46 = arith.addf %43, %45 : vector<1x128xf32>
    %47 = math.rsqrt %46 : vector<1x128xf32>
    %48 = vector.extract_strided_slice %44 {offsets = [0, 0], sizes = [1, 128], strides = [1, 1]} : vector<2x128xf32> to vector<1x128xf32>
    %49 = arith.mulf %47, %48 : vector<1x128xf32>
    %50 = vector.extract_strided_slice %44 {offsets = [1, 0], sizes = [1, 128], strides = [1, 1]} : vector<2x128xf32> to vector<1x128xf32>
    %51 = arith.mulf %36, %49 : vector<1x128xf32>
    %52 = arith.subf %50, %51 : vector<1x128xf32>
    %53 = vector.broadcast %49 : vector<1x128xf32> to vector<16x128xf32>
    %54 = arith.mulf %32, %53 : vector<16x128xf32>
    %55 = vector.broadcast %52 : vector<1x128xf32> to vector<16x128xf32>
    %56 = arith.addf %54, %55 : vector<16x128xf32>
    %cst_21 = arith.constant 0.000000e+00 : f32
    %57 = vector.broadcast %cst_21 : f32 to vector<16x128xf32>
    %58 = arith.maximumf %56, %57 : vector<16x128xf32>
    %59 = arith.truncf %58 : vector<16x128xf32> to vector<16x128xbf16>
    %c0_22 = arith.constant 0 : index
    %c0_23 = arith.constant 0 : index
    %60 = vector.load %arg6[%c0_22, %c0_23] : memref<128x128xbf16, #tpu.memory_space<vmem>>, vector<128x128xbf16>
    %cst_24 = arith.constant dense<0.000000e+00> : vector<16x128xf32>
    %61 = tpu.matmul %59, %60, %cst_24 {dimension_numbers = #tpu.dot_dimension_numbers<[1], [0], [0], [1], [0, 0, 1, 1], [], []>} : vector<16x128xbf16>, vector<128x128xbf16>, vector<16x128xf32> -> vector<16x128xf32>
    %c0_25 = arith.constant 0 : index
    %c0_26 = arith.constant 0 : index
    %62 = vector.load %arg7[%c0_25, %c0_26] : memref<1x128xf32, #tpu.memory_space<vmem>>, vector<1x128xf32>
    %63 = vector.broadcast %62 : vector<1x128xf32> to vector<16x128xf32>
    %64 = arith.addf %61, %63 : vector<16x128xf32>
    %c0_27 = arith.constant 0 : index
    %c0_28 = arith.constant 0 : index
    %65 = vector.load %arg8[%c0_27, %c0_28] : memref<16x128xf32, #tpu.memory_space<vmem>>, vector<16x128xf32>
    tpu.vector_store %arg8[%c0_27, %c0_28], %64 {strides = array<i32>} : memref<16x128xf32, #tpu.memory_space<vmem>>, vector<16x128xf32>,
    return
  }
  func.func @transform_0(%arg0: i32) -> (i32, i32) {
    %c0_i32 = arith.constant 0 : i32
    %c0_i32_0 = arith.constant 0 : i32
    %c0_i32_1 = arith.constant 0 : i32
    return %c0_i32, %c0_i32_0 : i32, i32
  }
  func.func @transform_1(%arg0: i32) -> (i32, i32) {
    %c0_i32 = arith.constant 0 : i32
    %c0_i32_0 = arith.constant 0 : i32
    %c0_i32_1 = arith.constant 0 : i32
    return %c0_i32, %c0_i32_0 : i32, i32
  }
  func.func @transform_2(%arg0: i32) -> (i32, i32) {
    %c0_i32 = arith.constant 0 : i32
    %c0_i32_0 = arith.constant 0 : i32
    %c0_i32_1 = arith.constant 0 : i32
    return %c0_i32, %c0_i32_0 : i32, i32
  }
  func.func @transform_3(%arg0: i32) -> (i32, i32) {
    %c0_i32 = arith.constant 0 : i32
    %c0_i32_0 = arith.constant 0 : i32
    %c0_i32_1 = arith.constant 0 : i32
    return %c0_i32, %c0_i32_0 : i32, i32
  }
  func.func @transform_4(%arg0: i32) -> (i32, i32) {
    %c0_i32 = arith.constant 0 : i32
    %c0_i32_0 = arith.constant 0 : i32
    %c0_i32_1 = arith.constant 0 : i32
    return %c0_i32, %c0_i32_0 : i32, i32
  }
  func.func @transform_5(%arg0: i32) -> (i32, i32) {
    %c0_i32 = arith.constant 0 : i32
    %c0_i32_0 = arith.constant 0 : i32
    %c0_i32_1 = arith.constant 0 : i32
    return %c0_i32, %c0_i32_0 : i32, i32
  }
  func.func @transform_6(%arg0: i32) -> (i32, i32) {
    %c0_i32 = arith.constant 0 : i32
    %c0_i32_0 = arith.constant 0 : i32
    %c0_i32_1 = arith.constant 0 : i32
    return %c0_i32, %c0_i32_0 : i32, i32
  }
  func.func @transform_7(%arg0: i32) -> (i32, i32) {
    %c0_i32 = arith.constant 0 : i32
    %c0_i32_0 = arith.constant 0 : i32
    %c0_i32_1 = arith.constant 0 : i32
    return %c0_i32, %c0_i32_0 : i32, i32
  }
}

</mosaic_0001>

<bundles_post_ra>
// kernel: tpu_custom_call.1
= control target key start
LH: loop header
LB: loop body
LE: loop exit
PB: predicated region body
PF: predicated region fallthrough
CT: control target
= control target key end

     0   :  { %12 = vsyncpa [#allocation3], 0  ;;  %s889_s0 = inlined_call_operand.hbm [shape: f32[16,32], index: 0, kind: input, shape index: {}]   ;;  %s890_s1 = inlined_call_operand.hbm [shape: bf16[32,128], index: 1, kind: input, shape index: {}]   ;;  %s891_s2 = inlined_call_operand.vmem [shape: f32[2,128], index: 2, kind: input, shape index: {}]   ;;  %s892_s3 = inlined_call_operand.hbm [shape: bf16[128,128], index: 3, kind: input, shape index: {}]   ;;  %s893_s4 = inlined_call_operand.vmem [shape: f32[2,128], index: 4, kind: input, shape index: {}]   ;;  %s894_s5 = inlined_call_operand.hbm [shape: bf16[128,128], index: 5, kind: input, shape index: {}]   ;;  %s895_s6 = inlined_call_operand.vmem [shape: f32[1,128], index: 6, kind: input, shape index: {}]   ;;  %s896_s7 = inlined_call_operand.hbm [shape: f32[16,128], index: 7, kind: output, shape index: {}]  }
   0x1   :  { %13 = vsyncpa [#allocation6], 0 }
   0x2   :  { %14 = vsyncpa [#allocation9], 0 }
   0x3   :  { %15 = vsyncpa [#allocation4], 0  ;;  %s714_s24 = smov [#allocation5]   ;;  %s596_s28 = scalar_lea.hbm %s890_s1, 256 }
   0x4   :  { %s33_s25 = sshll.u32 %s714_s24, 4  ;;  %p597_p0 = scmp.ne.s32.totalorder %s890_s1, %s596_s28  ;;  %s34_s25 = int_to_ptr.vmem [resolvable:$true] %s33_s25 }
   0x5   :  { %p600_p1 = scmp.lt.u32.totalorder %s596_s28, %s890_s1 }
   0x7   :  { %p602_p2 = pnand %p600_p1, %p597_p0 }
   0x9   :  { %605 = shalt.err (!%p602_p2)
}
   0xa   :  { %s606_s10 = scalar_lea.vmem %s34_s25, 256  ;;  %p611_p4 = scmp.lt.s32.totalorder %s34_s25, %s34_s25 }
   0xb   :  { %p607_p3 = scmp.ne.s32.totalorder %s34_s25, %s606_s10  ;;  %p612_p5 = scmp.lt.s32.totalorder %s606_s10, %s606_s10 }
   0xd   :  { %p613_p6 = por %p612_p5, %p611_p4 }
   0xf   :  { %p614_p7 = pnand %p613_p6, %p607_p3 }
  0x11   :  { %617 = shalt.err (!%p614_p7)
}
  0x12   :  { %s715_s11 = smov 64   ;;  %s716_s12 = smov 4  }
  0x13   :  { %39 = dma.hbm_to_vmem [thread:$0]  %s890_s1, 256, %s34_s25, [#allocation6], %s715_s11, %s715_s11, %s716_s12  }
  0x14   :  { %s717_s15 = smov [#allocation2]   ;;  %s618_s19 = scalar_lea.hbm %s889_s0, 256 }
  0x15   :  { %s21_s16 = sshll.u32 %s717_s15, 4  ;;  %p619_p8 = scmp.ne.s32.totalorder %s889_s0, %s618_s19  ;;  %s22_s16 = int_to_ptr.vmem [resolvable:$true] %s21_s16 }
  0x16   :  { %p622_p9 = scmp.lt.u32.totalorder %s618_s19, %s889_s0 }
  0x18   :  { %p624_p10 = pnand %p622_p9, %p619_p8 }
  0x1a   :  { %627 = shalt.err (!%p624_p10)
}
  0x1b   :  { %s628_s24 = scalar_lea.vmem %s22_s16, 256  ;;  %p633_p12 = scmp.lt.s32.totalorder %s22_s16, %s22_s16 }
  0x1c   :  { %p629_p11 = scmp.ne.s32.totalorder %s22_s16, %s628_s24  ;;  %p634_p13 = scmp.lt.s32.totalorder %s628_s24, %s628_s24 }
  0x1e   :  { %p635_p0 = por %p634_p13, %p633_p12 }
  0x20   :  { %p636_p1 = pnand %p635_p0, %p629_p11 }
  0x22   :  { %639 = shalt.err (!%p636_p1)
}
  0x23   :  { %s718_s1 = smov 128   ;;  %s719_s25 = smov 8  }
  0x24   :  { %27 = dma.hbm_to_vmem [thread:$0]  %s889_s0, 256, %s22_s16, [#allocation3], %s718_s1, %s718_s1, %s719_s25  }
  0x25   :  { %s720_s28 = smov [#allocation7]   ;;  %s721_s30 = smov [#allocation8]  }
  0x26   :  { %s47_s29 = sshll.u32 %s720_s28, 4  ;;  %s61_s8 = sshll.u32 %s721_s30, 4  ;;  %s48_s29 = int_to_ptr.vmem [resolvable:$true] %s47_s29  ;;  %s795_s8 = int_to_ptr.vmem [resolvable:$true] %s61_s8 }
  0x27   :  { %s640_s13 = scalar_lea.hbm %s892_s3, 1024 }
  0x28   :  { %p641_p2 = scmp.ne.s32.totalorder %s892_s3, %s640_s13  ;;  %p644_p3 = scmp.lt.u32.totalorder %s640_s13, %s892_s3 }
  0x2a   :  { %p646_p4 = pnand %p644_p3, %p641_p2 }
  0x2c   :  { %649 = shalt.err (!%p646_p4)
}
  0x2d   :  { %s650_s0 = scalar_lea.vmem %s48_s29, 1024  ;;  %p655_p6 = scmp.lt.s32.totalorder %s48_s29, %s48_s29 }
  0x2e   :  { %p651_p5 = scmp.ne.s32.totalorder %s48_s29, %s650_s0  ;;  %p656_p7 = scmp.lt.s32.totalorder %s650_s0, %s650_s0 }
  0x30   :  { %p657_p8 = por %p656_p7, %p655_p6 }
  0x32   :  { %p658_p9 = pnand %p657_p8, %p651_p5 }
  0x34   :  { %661 = shalt.err (!%p658_p9)
}
  0x35   :  { %53 = dma.hbm_to_vmem [thread:$0]  %s892_s3, 1024, %s48_s29, [#allocation6], %s715_s11, %s715_s11, %s716_s12  }
  0x36   :  { %s662_s22 = scalar_lea.hbm %s894_s5, 1024 }
  0x37   :  { %p663_p10 = scmp.ne.s32.totalorder %s894_s5, %s662_s22  ;;  %p666_p11 = scmp.lt.u32.totalorder %s662_s22, %s894_s5 }
  0x39   :  { %p668_p12 = pnand %p666_p11, %p663_p10 }
  0x3b   :  { %671 = shalt.err (!%p668_p12)
}
  0x3c   :  { %s672_s28 = scalar_lea.vmem %s795_s8, 1024  ;;  %p677_p0 = scmp.lt.s32.totalorder %s795_s8, %s795_s8 }
  0x3d   :  { %p673_p13 = scmp.ne.s32.totalorder %s795_s8, %s672_s28  ;;  %p678_p1 = scmp.lt.s32.totalorder %s672_s28, %s672_s28 }
  0x3f   :  { %p679_p2 = por %p678_p1, %p677_p0 }
  0x41   :  { %p680_p3 = pnand %p679_p2, %p673_p13 }
  0x43   :  { %683 = shalt.err (!%p680_p3)
}
  0x44   :  { %67 = dma.hbm_to_vmem [thread:$0]  %s894_s5, 1024, %s795_s8, [#allocation9], %s715_s11, %s715_s11, %s716_s12  }
  0x45   :  { %706 = dma.done.wait [#allocation3], 256  }
  0x46   :  { %707 = vsyncadd [#allocation3], 4294967040 }
  0x47   :  { %708 = dma.done.wait [#allocation6], 1280  }
  0x48   :  { %709 = vsyncadd [#allocation6], 4294966016 }
  0x49   :  { %710 = dma.done.wait [#allocation9], 1024  }
  0x4a   :  { %711 = vsyncadd [#allocation9], 4294966272  ;;  %v722_v0 = vmov 0.0   ;;  %vm723_vm0 = vmmov 0   ;;  %v574_v1 = vld [vmem:[#allocation5] sm:$0xff]   ;;  %v575_v2 = vld [vmem:[#allocation5 + $0x8] sm:$0xff]   ;;  %v177_v39 = vlaneseq }
  0x4b   :  { %515 = vmatprep.subr.bf16.mxu0 %v722_v0  ;;  %519 = vmatprep.mubr.msk.bf16.mxu0 %vm723_vm0, %v722_v0  ;;  %v83_v3 = vld [vmem:[#allocation2] sm:$0xff]  ;;  %v84_v4 = vld [vmem:[#allocation2 + $0x8] sm:$0xff]  ;;  %vm102_vm1 = vcmask 261120   ;;  %v578_v8 = vld [vmem:[#allocation7 + $0x10] sm:$0xff]   ;;  %s724_s8 = smov [#allocation10]  }
  0x4c   :  { %523 = vmatprep.subr.bf16.mxu1 %v722_v0  ;;  %539 = vmatprep.mubr.msk.bf16.mxu1 %vm723_vm0, %v722_v0  ;;  %v85_v5 = vpack.c.bf16 %v84_v4, %v83_v3  ;;  %v576_v6 = vld [vmem:[#allocation7] sm:$0xff]   ;;  %v577_v7 = vld [vmem:[#allocation7 + $0x8] sm:$0xff]   ;;  %v579_v9 = vld [vmem:[#allocation7 + $0x18] sm:$0xff]   ;;  %v846_v40 = vshrl.u32 %v177_v39, 7  ;;  %s460_s9 = sshll.u32 %s724_s8, 4  ;;  %s461_s9 = int_to_ptr.vmem [resolvable:$true] %s460_s9 }
  0x4d   :  { %516 = vmatpush3.bf16.msra.mxu0 %v574_v1  ;;  %524 = vmatpush3.bf16.msra.mxu1 %v576_v6  ;;  %v580_v10 = vld [vmem:[#allocation7 + $0x20] sm:$0xff]   ;;  %v581_v11 = vld [vmem:[#allocation7 + $0x28] sm:$0xff]   ;;  %v582_v12 = vld [vmem:[#allocation7 + $0x30] sm:$0xff]   ;;  %s684_s10 = scalar_lea.vmem %s461_s9, 256  ;;  %p689_p5 = scmp.lt.s32.totalorder %s461_s9, %s461_s9 }
  0x4e   :  { %517 = vmatprep.subr.bf16.mxu0 %v722_v0  ;;  %525 = vmatprep.subr.bf16.mxu1 %v722_v0  ;;  %v583_v13 = vld [vmem:[#allocation7 + $0x38] sm:$0xff]   ;;  %v168_v41 = vld [vmem:[%s891_s2] sm:$0x3]  ;;  %v179_v42 = vsub.s32 0, %v846_v40  ;;  %v185_v50 = vsub.s32 1, %v846_v40  ;;  %v585_v59 = vld [vmem:[#allocation8 + $0x8] sm:$0xff]   ;;  %p685_p4 = scmp.ne.s32.totalorder %s461_s9, %s684_s10  ;;  %p690_p6 = scmp.lt.s32.totalorder %s684_s10, %s684_s10 }
  0x4f   :  { %v584_v58 = vld [vmem:[#allocation8] sm:$0xff]   ;;  %v586_v60 = vld [vmem:[#allocation8 + $0x10] sm:$0xff]   ;;  %v587_v61 = vld [vmem:[#allocation8 + $0x18] sm:$0xff]  }
  0x50   :  { %v588_v62 = vld [vmem:[#allocation8 + $0x20] sm:$0xff]   ;;  %v589_v63 = vld [vmem:[#allocation8 + $0x28] sm:$0xff]   ;;  %v590_v1 = vld [vmem:[#allocation8 + $0x30] sm:$0xff]   ;;  %p691_p7 = por %p690_p6, %p689_p5 }
  0x51   :  { %518 = vmatpush3.bf16.msra.mxu0 %v575_v2  ;;  %526 = vmatpush3.bf16.msra.mxu1 %v577_v7  ;;  %v591_v2 = vld [vmem:[#allocation8 + $0x38] sm:$0xff]  }
  0x52   :  { %543 = vmatprep.subr.bf16.mxu0 %v722_v0  ;;  %527 = vmatprep.subr.bf16.mxu1 %v722_v0  ;;  %p692_p8 = pnand %p691_p7, %p685_p4 }
  0x54   :  { %520 = vmatmul.mubr.msk.bf16.vlgmr.msra.gmra.mrb[0].mxu0 %vm102_vm1, %v85_v5 }
  0x55   :  { %559 = vmatprep.mubr.msk.bf16.mxu0 %vm723_vm0, %v722_v0  ;;  %528 = vmatpush3.bf16.msra.mxu1 %v578_v8 }
  0x56   :  { %529 = vmatprep.subr.bf16.mxu1 %v722_v0  ;;  %544 = vmatpush3.bf16.msra.mxu0 %v584_v58 }
  0x57   :  { %545 = vmatprep.subr.bf16.mxu0 %v722_v0 }
  0x59   :  { %530 = vmatpush3.bf16.msra.mxu1 %v579_v9 }
  0x5a   :  { %531 = vmatprep.subr.bf16.mxu1 %v722_v0  ;;  %546 = vmatpush3.bf16.msra.mxu0 %v585_v59 }
  0x5b   :  { %547 = vmatprep.subr.bf16.mxu0 %v722_v0 }
  0x5d   :  { %532 = vmatpush3.bf16.msra.mxu1 %v580_v10 }
  0x5e   :  { %533 = vmatprep.subr.bf16.mxu1 %v722_v0  ;;  %548 = vmatpush3.bf16.msra.mxu0 %v586_v60 }
  0x5f   :  { %549 = vmatprep.subr.bf16.mxu0 %v722_v0 }
  0x61   :  { %534 = vmatpush3.bf16.msra.mxu1 %v581_v11 }
  0x62   :  { %535 = vmatprep.subr.bf16.mxu1 %v722_v0  ;;  %550 = vmatpush3.bf16.msra.mxu0 %v587_v61 }
  0x63   :  { %551 = vmatprep.subr.bf16.mxu0 %v722_v0 }
  0x65   :  { %536 = vmatpush3.bf16.msra.mxu1 %v582_v12 }
  0x66   :  { %537 = vmatprep.subr.bf16.mxu1 %v722_v0  ;;  %552 = vmatpush3.bf16.msra.mxu0 %v588_v62 }
  0x67   :  { %553 = vmatprep.subr.bf16.mxu0 %v722_v0 }
  0x69   :  { %538 = vmatpush3.bf16.msra.mxu1 %v583_v13 }
  0x6a   :  { %554 = vmatpush3.bf16.msra.mxu0 %v589_v63 }
  0x6b   :  { %555 = vmatprep.subr.bf16.mxu0 %v722_v0 }
  0x6e   :  { %556 = vmatpush3.bf16.msra.mxu0 %v590_v1 }
  0x6f   :  { %557 = vmatprep.subr.bf16.mxu0 %v722_v0 }
  0x72   :  { %558 = vmatpush3.bf16.msra.mxu0 %v591_v2 }
 0x127   :  { %v140_v14 = vpop.f32.mrb[0].mxu0 }
 0x128   :  { %v521_v15 = vpop.f32.mrb[1].mxu0  ;;  %v156_v17 = vmul.f32 %v140_v14, %v140_v14 }
 0x129   :  { %v143_v16 = vpop.f32.mrb[2].mxu0 }
 0x12a   :  { %v147_v18 = vadd.f32 %v143_v16, %v140_v14  ;;  %v157_v19 = vmul.f32 %v143_v16, %v143_v16  ;;  %v522_v20 = vpop.f32.mrb[3].mxu0 }
 0x12c   :  { %v148_v21 = vrot.slane %v147_v18, 4  ;;  %v158_v22 = vadd.f32 %v157_v19, %v156_v17 }
 0x12e   :  { %v149_v23 = vadd.f32 %v148_v21, %v147_v18  ;;  %v159_v24 = vrot.slane %v158_v22, 4 }
 0x130   :  { %v150_v25 = vrot.slane %v149_v23, 2  ;;  %v160_v26 = vadd.f32 %v159_v24, %v158_v22 }
 0x132   :  { %v151_v27 = vadd.f32 %v150_v25, %v149_v23  ;;  %v161_v28 = vrot.slane %v160_v26, 2 }
 0x134   :  { %v152_v29 = vrot.slane %v151_v27, 1  ;;  %v162_v30 = vadd.f32 %v161_v28, %v160_v26 }
 0x136   :  { %v153_v31 = vadd.f32 %v152_v29, %v151_v27  ;;  %v163_v32 = vrot.slane %v162_v30, 1  ;;  %v317_v27 = vld [vmem:[%s893_s4] sm:$0x3] }
 0x138   :  { %v155_v33 = vmul.f32 0.0625, %v153_v31  ;;  %v164_v34 = vadd.f32 %v163_v32, %v162_v30 }
 0x13a   :  { %v165_v35 = vmul.f32 0.0625, %v164_v34  ;;  %v166_v36 = vmul.f32 %v155_v33, %v155_v33 }
 0x13c   :  { %v167_v37 = vsub.f32 %v165_v35, %v166_v36 }
 0x13e   :  { %v169_v38 = vadd.f32 1e-05, %v167_v37 }
 0x140   :  { %592 = vrsqrt.f32 %v169_v38 }
 0x14a   :  { %v593_v43 = vpop.eup %592 }
 0x14b   :  { %v171_v44 = vmul.f32 %v593_v43, %v168_v41 }
 0x14d   :  { %v172_v45 = vmul.f32 %v171_v44, %v155_v33  ;;  %v180_v46 = vrot.slane %v171_v44, %v179_v42  ;;  %v485_v44 = vld [vmem:[%s895_s6] ss:$0 sm:$0xff] }
 0x14f   :  { %v174_v47 = vrot.slane %v172_v45, 7  ;;  %v181_v48 = vmul.f32 %v180_v46, %v140_v14  ;;  %v182_v49 = vmul.f32 %v180_v46, %v143_v16 }
 0x151   :  { %v176_v51 = vsub.f32 %v168_v41, %v174_v47 }
 0x153   :  { %v186_v52 = vrot.slane %v176_v51, %v185_v50 }
 0x155   :  { %v188_v53 = vadd.f32 %v186_v52, %v182_v49  ;;  %v187_v54 = vadd.f32 %v186_v52, %v181_v48 }
 0x157   :  { %v189_v55 = vmax.f32 %v187_v54, 0.0  ;;  %v190_v56 = vmax.f32 %v188_v53, 0.0 }
 0x159   :  { %v191_v57 = vpack.c.bf16 %v190_v56, %v189_v55 }
 0x15b   :  { %540 = vmatmul.mubr.bf16.vlgmr.msra.gmra.mrb[0].mxu1 %v191_v57 }
 0x22e   :  { %v290_v3 = vpop.f32.mrb[0].mxu1 }
 0x22f   :  { %v541_v4 = vpop.f32.mrb[1].mxu1  ;;  %v305_v6 = vmul.f32 %v290_v3, %v290_v3 }
 0x230   :  { %v293_v5 = vpop.f32.mrb[2].mxu1 }
 0x231   :  { %v297_v7 = vadd.f32 %v293_v5, %v290_v3  ;;  %v306_v8 = vmul.f32 %v293_v5, %v293_v5  ;;  %v542_v9 = vpop.f32.mrb[3].mxu1 }
 0x233   :  { %v298_v10 = vrot.slane %v297_v7, 4  ;;  %v307_v11 = vadd.f32 %v306_v8, %v305_v6 }
 0x235   :  { %v299_v12 = vadd.f32 %v298_v10, %v297_v7  ;;  %v308_v13 = vrot.slane %v307_v11, 4 }
 0x237   :  { %v300_v14 = vrot.slane %v299_v12, 2  ;;  %v309_v15 = vadd.f32 %v308_v13, %v307_v11 }
 0x239   :  { %v301_v16 = vadd.f32 %v300_v14, %v299_v12  ;;  %v310_v17 = vrot.slane %v309_v15, 2 }
 0x23b   :  { %v302_v18 = vrot.slane %v301_v16, 1  ;;  %v311_v19 = vadd.f32 %v310_v17, %v309_v15 }
 0x23d   :  { %v303_v0 = vadd.f32 %v302_v18, %v301_v16  ;;  %v312_v20 = vrot.slane %v311_v19, 1 }
 0x23f   :  { %v304_v21 = vmul.f32 0.0625, %v303_v0  ;;  %v313_v22 = vadd.f32 %v312_v20, %v311_v19 }
 0x241   :  { %v314_v23 = vmul.f32 0.0625, %v313_v22  ;;  %v315_v24 = vmul.f32 %v304_v21, %v304_v21 }
 0x243   :  { %v316_v25 = vsub.f32 %v314_v23, %v315_v24 }
 0x245   :  { %v318_v26 = vadd.f32 1e-05, %v316_v25 }
 0x247   :  { %594 = vrsqrt.f32 %v318_v26 }
 0x251   :  { %v595_v28 = vpop.eup %594 }
 0x252   :  { %v320_v29 = vmul.f32 %v595_v28, %v317_v27 }
 0x254   :  { %v321_v30 = vmul.f32 %v320_v29, %v304_v21  ;;  %v329_v31 = vrot.slane %v320_v29, %v179_v42 }
 0x256   :  { %v323_v32 = vrot.slane %v321_v30, 7  ;;  %v330_v33 = vmul.f32 %v329_v31, %v290_v3  ;;  %v331_v34 = vmul.f32 %v329_v31, %v293_v5 }
 0x258   :  { %v325_v35 = vsub.f32 %v317_v27, %v323_v32 }
 0x25a   :  { %v335_v36 = vrot.slane %v325_v35, %v185_v50 }
 0x25c   :  { %v336_v37 = vadd.f32 %v335_v36, %v330_v33  ;;  %v337_v38 = vadd.f32 %v335_v36, %v331_v34 }
 0x25e   :  { %v339_v39 = vmax.f32 %v337_v38, 0.0  ;;  %v338_v41 = vmax.f32 %v336_v37, 0.0 }
 0x260   :  { %v340_v43 = vpack.c.bf16 %v339_v39, %v338_v41 }
 0x262   :  { %560 = vmatmul.mubr.bf16.vlgmr.msra.gmra.mrb[4].mxu0 %v340_v43 }
 0x335   :  { %v446_v45 = vpop.f32.mrb[4].mxu0 }
 0x336   :  { %v447_v42 = vadd.f32 %v485_v44, %v446_v45  ;;  %v561_v46 = vpop.f32.mrb[5].mxu0 }
 0x337   :  { %v449_v47 = vpop.f32.mrb[6].mxu0 }
 0x338   :  { %453 = vst [vmem:[#allocation10] sm:$0xff] %v447_v42  ;;  %v450_v48 = vadd.f32 %v485_v44, %v449_v47  ;;  %v562_v40 = vpop.f32.mrb[7].mxu0 }
 0x33a   :  { %454 = vst [vmem:[#allocation10 + $0x8] sm:$0xff] %v450_v48 }
 0x33b   :  { %695 = shalt.err (!%p692_p8)
}
 0x33c   :  { %s696_s14 = scalar_lea.hbm %s896_s7, 256 }
 0x33d   :  { %p697_p9 = scmp.ne.s32.totalorder %s896_s7, %s696_s14  ;;  %p700_p10 = scmp.lt.u32.totalorder %s696_s14, %s896_s7 }
 0x33f   :  { %p702_p11 = pnand %p700_p10, %p697_p9 }
 0x341   :  { %705 = shalt.err (!%p702_p11)
}
 0x342   :  { %466 = dma.vmem_to_hbm [thread:$0]  %s461_s9, 256, %s896_s7, [#allocation4], %s718_s1, %s718_s1, %s719_s25  }
 0x343   :  { %712 = dma.done.wait [#allocation4], 256  }
 0x344   :  { %713 = vsyncadd [#allocation4], 4294967040 }
 0x345   :  { %470 = vsyncpa [#allocation3], 1 }
 0x346   :  { %471 = vsyncpa [#allocation6], 1 }
 0x347   :  { %472 = vsyncpa [#allocation9], 1 }
 0x348   :  { %473 = vsyncpa [#allocation4], 1 }

</bundles_post_ra>
